<compile_context>
chip_gen: v5e
topology: v5e:2x2
jax: 0.10.0
libtpu: 0.0.40
codegen_flags: <defaults>
</compile_context>

<pallas_src>
import math
import functools

import jax
import jax.numpy as jnp
from jax.experimental import pallas as pl
from jax.experimental.pallas import tpu as pltpu


def _mha_kernel(num_heads, head_dim, eps,
                q_ref, k_ref, v_ref, mask_ref,
                wq_ref, wk_ref, wv_ref, wot_ref, bo_ref, g_ref, b_ref,
                out_ref, probs_ref=None):
    # Per grid step shapes:
    #   q_ref:   (TQ, D) f32      k_ref/v_ref: (T, D) bf16
    #   mask_ref:(TQ, T) bf16     (1 keep / 0 masked)
    #   wq/wk/wv_ref: (H, hd, D) bf16   (head-split weight rows; Wq pre-scaled)
    #   wot_ref: (H, hd, D) bf16        (head-split Wo^T)
    #   bo/g/b:  (1, D) f32
    #   out_ref: (TQ, D) f32      probs_ref: (H, TQ, T) f32 (optional)
    H, hd = num_heads, head_dim
    TQ = q_ref.shape[0]
    T = k_ref.shape[0]
    D = q_ref.shape[1]

    q_f32 = q_ref[...]                              # kept f32 for residual/LN
    q_b = jnp.broadcast_to(q_f32.astype(jnp.bfloat16)[None], (H, TQ, D))
    k_b = jnp.broadcast_to(k_ref[...][None], (H, T, D))
    v_b = jnp.broadcast_to(v_ref[...][None], (H, T, D))

    # Head-batched projections on the MXU: bf16 operands, f32 accumulation.
    # qh[h,q,d] = sum_c q[q,c] * Wq_scaled[h*hd+d, c]
    qh = jnp.einsum('hqc,hdc->hqd', q_b, wq_ref[...],
                    preferred_element_type=jnp.float32)
    kh = jnp.einsum('hkc,hdc->hkd', k_b, wk_ref[...],
                    preferred_element_type=jnp.float32)
    vh = jnp.einsum('hkc,hdc->hkd', v_b, wv_ref[...],
                    preferred_element_type=jnp.float32)

    # Attention scores for all heads in one batched contraction.
    # (scale already folded into Wq host-side.)
    scores = jnp.einsum('hqd,hkd->hqk', qh.astype(jnp.bfloat16),
                        kh.astype(jnp.bfloat16),
                        preferred_element_type=jnp.float32)
    # Additive mask bias built once per (TQ,T) tile, f32, broadcast over heads.
    bias = (1.0 - mask_ref[...].astype(jnp.float32)) * (-1e9)
    scores = scores + bias[None, :, :]

    # Numerically stable softmax; divide -> EUP reciprocal.
    scores = scores - jnp.max(scores, axis=-1, keepdims=True)
    e = jnp.exp(scores)                              # (H, TQ, T) f32, <= 1
    denom = jnp.sum(e, axis=-1, keepdims=True)
    inv_denom = pl.reciprocal(denom, approx=True)    # (H, TQ, 1) f32

    # TODO(synk): dropout on attn_probs / outputs omitted (eval semantics).

    vh_b = vh.astype(jnp.bfloat16)
    if probs_ref is not None:
        probs = e * inv_denom                        # (H, TQ, T) f32
        probs_ref[...] = probs
        ctx = jnp.einsum('hqk,hkd->hqd', probs.astype(jnp.bfloat16), vh_b,
                         preferred_element_type=jnp.float32)   # (H, TQ, hd)
    else:
        # Deferred normalization: normalize the (much smaller) context
        # instead of the full probability tensor.
        ctx = jnp.einsum('hqk,hkd->hqd', e.astype(jnp.bfloat16), vh_b,
                         preferred_element_type=jnp.float32)   # (H, TQ, hd)
        ctx = ctx * inv_denom

    # Output projection folded over heads (no combine-heads transpose:
    # contract against head-split Wo^T and reduce over the head axis).
    o_part = jnp.einsum('hqd,hdn->hqn', ctx.astype(jnp.bfloat16), wot_ref[...],
                        preferred_element_type=jnp.float32)     # (H, TQ, D)
    o = jnp.sum(o_part, axis=0) + bo_ref[...]                   # (TQ, D)

    # Residual + LayerNorm (f32).
    y = q_f32 + o
    mean = jnp.mean(y, axis=-1, keepdims=True)
    var = jnp.mean(jnp.square(y - mean), axis=-1, keepdims=True)
    y_norm = (y - mean) * jax.lax.rsqrt(var + eps)
    out_ref[...] = y_norm * g_ref[...] + b_ref[...]


def _pick_query_tile(S):
    for cand in (512, 256, 128):
        if S % cand == 0:
            return cand
    return S  # short sequences: take the whole thing


def multi_head_attention(q, k, v, attention_mask, params, num_heads,
                         eps: float = 1e-5, return_probs: bool = True):
    """q: (B,S,D), k/v: (B,T,D), attention_mask: (B,S,T) (1/True=keep, 0=mask).
    Returns (outputs (B,S,D), attn_probs (B,H,S,T)) or just outputs."""
    B, S, D = q.shape
    T = k.shape[1]
    H = num_heads
    assert D % H == 0
    hd = D // H

    TQ = _pick_query_tile(S)
    grid = (B, S // TQ)

    # Host-side weight prep (reshape only): head-split rows, bf16 for the MXU.
    # 1/sqrt(hd) folded into Wq (saves an elementwise pass over the scores).
    inv_scale = 1.0 / math.sqrt(hd)
    wq_h = (jnp.asarray(params["wq"], jnp.float32) * inv_scale
            ).reshape(H, hd, D).astype(jnp.bfloat16)
    wk_h = jnp.asarray(params["wk"], jnp.float32).reshape(H, hd, D).astype(jnp.bfloat16)
    wv_h = jnp.asarray(params["wv"], jnp.float32).reshape(H, hd, D).astype(jnp.bfloat16)
    wot_h = jnp.asarray(params["wo"], jnp.float32).T.reshape(H, hd, D).astype(jnp.bfloat16)
    bo = jnp.asarray(params["bo"], jnp.float32).reshape(1, D)
    gamma = jnp.asarray(params["gamma"], jnp.float32).reshape(1, D)
    beta = jnp.asarray(params["beta"], jnp.float32).reshape(1, D)

    q = jnp.asarray(q, jnp.float32)               # residual path stays f32
    k_b = jnp.asarray(k, jnp.bfloat16)            # matmul-only -> bf16 DMA
    v_b = jnp.asarray(v, jnp.bfloat16)
    mask_b = jnp.asarray(attention_mask, jnp.bfloat16)   # 0/1 exact in bf16

    kernel = functools.partial(_mha_kernel, H, hd, eps)

    qmap = lambda b, s: (b, s, 0)
    kvmap = lambda b, s: (b, 0, 0)
    w3map = lambda b, s: (0, 0, 0)
    w2map = lambda b, s: (0, 0)

    in_specs = [
        pl.BlockSpec((None, TQ, D), qmap),        # q (f32)
        pl.BlockSpec((None, T, D), kvmap),        # k (bf16)
        pl.BlockSpec((None, T, D), kvmap),        # v (bf16)
        pl.BlockSpec((None, TQ, T), qmap),        # mask (bf16)
        pl.BlockSpec((H, hd, D), w3map),          # Wq head-split (pre-scaled)
        pl.BlockSpec((H, hd, D), w3map),          # Wk head-split
        pl.BlockSpec((H, hd, D), w3map),          # Wv head-split
        pl.BlockSpec((H, hd, D), w3map),          # Wo^T head-split
        pl.BlockSpec((1, D), w2map),              # bo
        pl.BlockSpec((1, D), w2map),              # gamma
        pl.BlockSpec((1, D), w2map),              # beta
    ]

    if return_probs:
        out_shape = (jax.ShapeDtypeStruct((B, S, D), jnp.float32),
                     jax.ShapeDtypeStruct((B, H, S, T), jnp.float32))
        out_specs = (pl.BlockSpec((None, TQ, D), qmap),
                     pl.BlockSpec((None, H, TQ, T), lambda b, s: (b, 0, s, 0)))
    else:
        out_shape = jax.ShapeDtypeStruct((B, S, D), jnp.float32)
        out_specs = pl.BlockSpec((None, TQ, D), qmap)

    result = pl.pallas_call(
        kernel,
        out_shape=out_shape,
        grid=grid,
        in_specs=in_specs,
        out_specs=out_specs,
        compiler_params=pltpu.CompilerParams(
            dimension_semantics=("parallel", "parallel"),
            vmem_limit_bytes=48 * 1024 * 1024),
    )(q, k_b, v_b, mask_b, wq_h, wk_h, wv_h, wot_h, bo, gamma, beta)

    return result


def _reference(q, k, v, mask, params, num_heads, eps=1e-5):
    """Plain-JAX f32 reference mirroring the PyTorch forward (eval mode)."""
    B, S, D = q.shape
    H = num_heads
    hd = D // H
    qp = q @ params["wq"].T
    kp = k @ params["wk"].T
    vp = v @ params["wv"].T
    split = lambda x: x.reshape(B, -1, H, hd).transpose(0, 2, 1, 3)
    qh, kh, vh = split(qp), split(kp), split(vp)
    scores = jnp.einsum("bhsd,bhtd->bhst", qh, kh) / math.sqrt(hd)
    scores = scores + (1.0 - mask[:, None, :, :]) * (-1e9)
    probs = jax.nn.softmax(scores, axis=-1)
    ctx = jnp.einsum("bhst,bhtd->bhsd", probs, vh)
    ctx = ctx.transpose(0, 2, 1, 3).reshape(B, S, D)
    o = ctx @ params["wo"].T + params["bo"][0]
    y = q + o
    mean = jnp.mean(y, axis=-1, keepdims=True)
    var = jnp.mean((y - mean) ** 2, axis=-1, keepdims=True)
    y = (y - mean) / jnp.sqrt(var + eps)
    y = y * params["gamma"][0] + params["beta"][0]
    return y, probs


if __name__ == "__main__":
    B, S, T, D, H = 2, 8, 8, 32, 4

    key = jax.random.PRNGKey(0)
    keys = jax.random.split(key, 8)

    xavier = math.sqrt(6.0 / (D + D))
    bound = 1.0 / math.sqrt(D)
    params = {
        "wq": jax.random.uniform(keys[0], (D, D), jnp.float32, -xavier, xavier),
        "wk": jax.random.uniform(keys[1], (D, D), jnp.float32, -xavier, xavier),
        "wv": jax.random.uniform(keys[2], (D, D), jnp.float32, -bound, bound),
        "wo": jax.random.uniform(keys[3], (D, D), jnp.float32, -bound, bound),
        "bo": jax.random.uniform(keys[4], (1, D), jnp.float32, -bound, bound),
        "gamma": jnp.ones((1, D), jnp.float32),
        "beta": jnp.zeros((1, D), jnp.float32),
    }

    q = jax.random.normal(keys[5], (B, S, D), jnp.float32)
    k = jax.random.normal(keys[6], (B, T, D), jnp.float32)
    v = jax.random.normal(keys[7], (B, T, D), jnp.float32)
    # deterministic mask: hide the last two key positions for batch 1
    mask = jnp.ones((B, S, T), jnp.float32)
    mask = mask.at[1, :, -2:].set(0.0)

    out, probs = multi_head_attention(q, k, v, mask, params, num_heads=H)
    out = jax.block_until_ready(out)
    probs = jax.block_until_ready(probs)

    ref_out, ref_probs = _reference(q, k, v, mask, params, num_heads=H)
    # bf16 MXU operands + approx reciprocal vs f32 reference -> loose tolerance
    assert jnp.allclose(out, ref_out, atol=3e-2, rtol=3e-2), "output mismatch"
    assert jnp.allclose(probs, ref_probs, atol=2e-2, rtol=2e-2), "probs mismatch"

    # Fast path: no attention-prob writeback + deferred softmax normalization.
    out_only = multi_head_attention(q, k, v, mask, params, num_heads=H,
                                    return_probs=False)
    out_only = jax.block_until_ready(out_only)
    assert jnp.allclose(out_only, ref_out, atol=3e-2, rtol=3e-2), "fast-path mismatch"

    print("KERNEL_OK")
</pallas_src>

<mosaic_0001>
module attributes {stable_mosaic.version = 11 : i64} {
  func.func @_mha_kernel(%arg0: i32, %arg1: i32, %arg2: memref<1x8x32xf32, #tpu.memory_space<vmem>>, %arg3: memref<1x8x32xbf16, #tpu.memory_space<vmem>>, %arg4: memref<1x8x32xbf16, #tpu.memory_space<vmem>>, %arg5: memref<1x8x8xbf16, #tpu.memory_space<vmem>>, %arg6: memref<4x8x32xbf16, #tpu.memory_space<vmem>>, %arg7: memref<4x8x32xbf16, #tpu.memory_space<vmem>>, %arg8: memref<4x8x32xbf16, #tpu.memory_space<vmem>>, %arg9: memref<4x8x32xbf16, #tpu.memory_space<vmem>>, %arg10: memref<1x32xf32, #tpu.memory_space<vmem>>, %arg11: memref<1x32xf32, #tpu.memory_space<vmem>>, %arg12: memref<1x32xf32, #tpu.memory_space<vmem>>, %arg13: memref<1x8x32xf32, #tpu.memory_space<vmem>>, %arg14: memref<1x4x8x8xf32, #tpu.memory_space<vmem>>) attributes {dimension_semantics = [#tpu.dimension_semantics<parallel>, #tpu.dimension_semantics<parallel>], iteration_bounds = array<i64: 2, 1>, scalar_prefetch = 0 : i64, scratch_operands = 0 : i64, tpu.core_type = #tpu.core_type<tc>, window_params = [{transform_indices = @transform_0, window_bounds = array<i64: 1, 8, 32>}, {transform_indices = @transform_1, window_bounds = array<i64: 1, 8, 32>}, {transform_indices = @transform_2, window_bounds = array<i64: 1, 8, 32>}, {transform_indices = @transform_3, window_bounds = array<i64: 1, 8, 8>}, {pipeline_mode = #tpu.pipeline_mode<synchronous>, transform_indices = @transform_4, window_bounds = array<i64: 4, 8, 32>}, {pipeline_mode = #tpu.pipeline_mode<synchronous>, transform_indices = @transform_5, window_bounds = array<i64: 4, 8, 32>}, {pipeline_mode = #tpu.pipeline_mode<synchronous>, transform_indices = @transform_6, window_bounds = array<i64: 4, 8, 32>}, {pipeline_mode = #tpu.pipeline_mode<synchronous>, transform_indices = @transform_7, window_bounds = array<i64: 4, 8, 32>}, {pipeline_mode = #tpu.pipeline_mode<synchronous>, transform_indices = @transform_8, window_bounds = array<i64: 1, 32>}, {pipeline_mode = #tpu.pipeline_mode<synchronous>, transform_indices = @transform_9, window_bounds = array<i64: 1, 32>}, {pipeline_mode = #tpu.pipeline_mode<synchronous>, transform_indices = @transform_10, window_bounds = array<i64: 1, 32>}, {transform_indices = @transform_11, window_bounds = array<i64: 1, 8, 32>}, {transform_indices = @transform_12, window_bounds = array<i64: 1, 4, 8, 8>}]} {
    %c0 = arith.constant 0 : index
    %c0_0 = arith.constant 0 : index
    %c0_1 = arith.constant 0 : index
    %0 = vector.load %arg2[%c0, %c0_0, %c0_1] : memref<1x8x32xf32, #tpu.memory_space<vmem>>, vector<1x8x32xf32>
    %1 = vector.shape_cast %0 : vector<1x8x32xf32> to vector<8x32xf32>
    %2 = arith.truncf %1 : vector<8x32xf32> to vector<8x32xbf16>
    %3 = vector.shape_cast %2 : vector<8x32xbf16> to vector<1x8x32xbf16>
    %4 = vector.shape_cast %3 : vector<1x8x32xbf16> to vector<1x8x32xbf16>
    %5 = vector.broadcast %4 : vector<1x8x32xbf16> to vector<4x8x32xbf16>
    %c0_2 = arith.constant 0 : index
    %c0_3 = arith.constant 0 : index
    %c0_4 = arith.constant 0 : index
    %6 = vector.load %arg3[%c0_2, %c0_3, %c0_4] : memref<1x8x32xbf16, #tpu.memory_space<vmem>>, vector<1x8x32xbf16>
    %7 = vector.shape_cast %6 : vector<1x8x32xbf16> to vector<8x32xbf16>
    %8 = vector.shape_cast %7 : vector<8x32xbf16> to vector<1x8x32xbf16>
    %9 = vector.shape_cast %8 : vector<1x8x32xbf16> to vector<1x8x32xbf16>
    %10 = vector.broadcast %9 : vector<1x8x32xbf16> to vector<4x8x32xbf16>
    %c0_5 = arith.constant 0 : index
    %c0_6 = arith.constant 0 : index
    %c0_7 = arith.constant 0 : index
    %11 = vector.load %arg4[%c0_5, %c0_6, %c0_7] : memref<1x8x32xbf16, #tpu.memory_space<vmem>>, vector<1x8x32xbf16>
    %12 = vector.shape_cast %11 : vector<1x8x32xbf16> to vector<8x32xbf16>
    %13 = vector.shape_cast %12 : vector<8x32xbf16> to vector<1x8x32xbf16>
    %14 = vector.shape_cast %13 : vector<1x8x32xbf16> to vector<1x8x32xbf16>
    %15 = vector.broadcast %14 : vector<1x8x32xbf16> to vector<4x8x32xbf16>
    %c0_8 = arith.constant 0 : index
    %c0_9 = arith.constant 0 : index
    %c0_10 = arith.constant 0 : index
    %16 = vector.load %arg6[%c0_8, %c0_9, %c0_10] : memref<4x8x32xbf16, #tpu.memory_space<vmem>>, vector<4x8x32xbf16>
    "tpu.trace_start"() <{level = 10 : i32, message = "hqc,hdc->hqd"}> : () -> ()
    %cst = arith.constant dense<0.000000e+00> : vector<4x8x8xf32>
    %17 = tpu.matmul %5, %16, %cst {dimension_numbers = #tpu.dot_dimension_numbers<[2], [2], [1], [1], [0, 0, 0, 1, 1, 1], [0], [0]>} : vector<4x8x32xbf16>, vector<4x8x32xbf16>, vector<4x8x8xf32> -> vector<4x8x8xf32>
    "tpu.trace_stop"() : () -> ()
    %c0_11 = arith.constant 0 : index
    %c0_12 = arith.constant 0 : index
    %c0_13 = arith.constant 0 : index
    %18 = vector.load %arg7[%c0_11, %c0_12, %c0_13] : memref<4x8x32xbf16, #tpu.memory_space<vmem>>, vector<4x8x32xbf16>
    "tpu.trace_start"() <{level = 10 : i32, message = "hkc,hdc->hkd"}> : () -> ()
    %cst_14 = arith.constant dense<0.000000e+00> : vector<4x8x8xf32>
    %19 = tpu.matmul %10, %18, %cst_14 {dimension_numbers = #tpu.dot_dimension_numbers<[2], [2], [1], [1], [0, 0, 0, 1, 1, 1], [0], [0]>} : vector<4x8x32xbf16>, vector<4x8x32xbf16>, vector<4x8x8xf32> -> vector<4x8x8xf32>
    "tpu.trace_stop"() : () -> ()
    %c0_15 = arith.constant 0 : index
    %c0_16 = arith.constant 0 : index
    %c0_17 = arith.constant 0 : index
    %20 = vector.load %arg8[%c0_15, %c0_16, %c0_17] : memref<4x8x32xbf16, #tpu.memory_space<vmem>>, vector<4x8x32xbf16>
    "tpu.trace_start"() <{level = 10 : i32, message = "hkc,hdc->hkd"}> : () -> ()
    %cst_18 = arith.constant dense<0.000000e+00> : vector<4x8x8xf32>
    %21 = tpu.matmul %15, %20, %cst_18 {dimension_numbers = #tpu.dot_dimension_numbers<[2], [2], [1], [1], [0, 0, 0, 1, 1, 1], [0], [0]>} : vector<4x8x32xbf16>, vector<4x8x32xbf16>, vector<4x8x8xf32> -> vector<4x8x8xf32>
    "tpu.trace_stop"() : () -> ()
    %22 = arith.truncf %17 : vector<4x8x8xf32> to vector<4x8x8xbf16>
    %23 = arith.truncf %19 : vector<4x8x8xf32> to vector<4x8x8xbf16>
    "tpu.trace_start"() <{level = 10 : i32, message = "hqd,hkd->hqk"}> : () -> ()
    %cst_19 = arith.constant dense<0.000000e+00> : vector<4x8x8xf32>
    %24 = tpu.matmul %22, %23, %cst_19 {dimension_numbers = #tpu.dot_dimension_numbers<[2], [2], [1], [1], [0, 0, 0, 1, 1, 1], [0], [0]>} : vector<4x8x8xbf16>, vector<4x8x8xbf16>, vector<4x8x8xf32> -> vector<4x8x8xf32>
    "tpu.trace_stop"() : () -> ()
    %c0_20 = arith.constant 0 : index
    %c0_21 = arith.constant 0 : index
    %c0_22 = arith.constant 0 : index
    %25 = vector.load %arg5[%c0_20, %c0_21, %c0_22] : memref<1x8x8xbf16, #tpu.memory_space<vmem>>, vector<1x8x8xbf16>
    %26 = vector.shape_cast %25 : vector<1x8x8xbf16> to vector<8x8xbf16>
    %27 = arith.extf %26 : vector<8x8xbf16> to vector<8x8xf32>
    %cst_23 = arith.constant 1.000000e+00 : f32
    %28 = vector.broadcast %cst_23 : f32 to vector<8x8xf32>
    %29 = arith.subf %28, %27 : vector<8x8xf32>
    %cst_24 = arith.constant -1.000000e+09 : f32
    %30 = vector.broadcast %cst_24 : f32 to vector<8x8xf32>
    %31 = arith.mulf %29, %30 : vector<8x8xf32>
    %32 = vector.shape_cast %31 : vector<8x8xf32> to vector<1x8x8xf32>
    %33 = vector.broadcast %32 : vector<1x8x8xf32> to vector<4x8x8xf32>
    %34 = arith.addf %24, %33 : vector<4x8x8xf32>
    %cst_25 = arith.constant dense<0xFF800000> : vector<4x8xf32>
    %35 = vector.multi_reduction <maximumf>, %34, %cst_25 [2] : vector<4x8x8xf32> to vector<4x8xf32>
    %36 = vector.shape_cast %35 : vector<4x8xf32> to vector<4x8x1xf32>
    %37 = vector.broadcast %36 : vector<4x8x1xf32> to vector<4x8x8xf32>
    %38 = arith.subf %34, %37 : vector<4x8x8xf32>
    %39 = math.exp %38 : vector<4x8x8xf32>
    %cst_26 = arith.constant dense<0.000000e+00> : vector<4x8xf32>
    %40 = vector.multi_reduction <add>, %39, %cst_26 [2] : vector<4x8x8xf32> to vector<4x8xf32>
    %41 = vector.shape_cast %40 : vector<4x8xf32> to vector<4x8x1xf32>
    %42 = tpu.reciprocal %41 {approx = true} : vector<4x8x1xf32> -> vector<4x8x1xf32>
    %43 = arith.truncf %21 : vector<4x8x8xf32> to vector<4x8x8xbf16>
    %44 = vector.broadcast %42 : vector<4x8x1xf32> to vector<4x8x8xf32>
    %45 = arith.mulf %39, %44 : vector<4x8x8xf32>
    %c0_27 = arith.constant 0 : index
    %c0_28 = arith.constant 0 : index
    %c0_29 = arith.constant 0 : index
    %c0_30 = arith.constant 0 : index
    %46 = vector.load %arg14[%c0_27, %c0_28, %c0_29, %c0_30] : memref<1x4x8x8xf32, #tpu.memory_space<vmem>>, vector<1x4x8x8xf32>
    %47 = vector.shape_cast %46 : vector<1x4x8x8xf32> to vector<4x8x8xf32>
    %48 = vector.shape_cast %45 : vector<4x8x8xf32> to vector<1x4x8x8xf32>
    tpu.vector_store %arg14[%c0_27, %c0_28, %c0_29, %c0_30], %48 {strides = array<i32>} : memref<1x4x8x8xf32, #tpu.memory_space<vmem>>, vector<1x4x8x8xf32>,
    %49 = arith.truncf %45 : vector<4x8x8xf32> to vector<4x8x8xbf16>
    "tpu.trace_start"() <{level = 10 : i32, message = "hqk,hkd->hqd"}> : () -> ()
    %cst_31 = arith.constant dense<0.000000e+00> : vector<4x8x8xf32>
    %50 = tpu.matmul %49, %43, %cst_31 {dimension_numbers = #tpu.dot_dimension_numbers<[2], [1], [1], [2], [0, 0, 0, 1, 1, 2], [0], [0]>} : vector<4x8x8xbf16>, vector<4x8x8xbf16>, vector<4x8x8xf32> -> vector<4x8x8xf32>
    "tpu.trace_stop"() : () -> ()
    %51 = arith.truncf %50 : vector<4x8x8xf32> to vector<4x8x8xbf16>
    %c0_32 = arith.constant 0 : index
    %c0_33 = arith.constant 0 : index
    %c0_34 = arith.constant 0 : index
    %52 = vector.load %arg9[%c0_32, %c0_33, %c0_34] : memref<4x8x32xbf16, #tpu.memory_space<vmem>>, vector<4x8x32xbf16>
    "tpu.trace_start"() <{level = 10 : i32, message = "hqd,hdn->hqn"}> : () -> ()
    %cst_35 = arith.constant dense<0.000000e+00> : vector<4x8x32xf32>
    %53 = tpu.matmul %51, %52, %cst_35 {dimension_numbers = #tpu.dot_dimension_numbers<[2], [1], [1], [2], [0, 0, 0, 1, 1, 2], [0], [0]>} : vector<4x8x8xbf16>, vector<4x8x32xbf16>, vector<4x8x32xf32> -> vector<4x8x32xf32>
    "tpu.trace_stop"() : () -> ()
    %cst_36 = arith.constant dense<0.000000e+00> : vector<8x32xf32>
    %54 = vector.multi_reduction <add>, %53, %cst_36 [0] : vector<4x8x32xf32> to vector<8x32xf32>
    %c0_37 = arith.constant 0 : index
    %c0_38 = arith.constant 0 : index
    %55 = vector.load %arg10[%c0_37, %c0_38] : memref<1x32xf32, #tpu.memory_space<vmem>>, vector<1x32xf32>
    %56 = vector.broadcast %55 : vector<1x32xf32> to vector<8x32xf32>
    %57 = arith.addf %54, %56 : vector<8x32xf32>
    %58 = arith.addf %1, %57 : vector<8x32xf32>
    %cst_39 = arith.constant dense<0.000000e+00> : vector<8xf32>
    %59 = vector.multi_reduction <add>, %58, %cst_39 [1] : vector<8x32xf32> to vector<8xf32>
    %60 = vector.shape_cast %59 : vector<8xf32> to vector<8x1xf32>
    %cst_40 = arith.constant 3.200000e+01 : f32
    %61 = vector.broadcast %cst_40 : f32 to vector<8x1xf32>
    %62 = arith.divf %60, %61 : vector<8x1xf32>
    %63 = vector.broadcast %62 : vector<8x1xf32> to vector<8x32xf32>
    %64 = arith.subf %58, %63 : vector<8x32xf32>
    %65 = arith.mulf %64, %64 : vector<8x32xf32>
    %cst_41 = arith.constant dense<0.000000e+00> : vector<8xf32>
    %66 = vector.multi_reduction <add>, %65, %cst_41 [1] : vector<8x32xf32> to vector<8xf32>
    %67 = vector.shape_cast %66 : vector<8xf32> to vector<8x1xf32>
    %cst_42 = arith.constant 3.200000e+01 : f32
    %68 = vector.broadcast %cst_42 : f32 to vector<8x1xf32>
    %69 = arith.divf %67, %68 : vector<8x1xf32>
    %70 = vector.broadcast %62 : vector<8x1xf32> to vector<8x32xf32>
    %71 = arith.subf %58, %70 : vector<8x32xf32>
    %cst_43 = arith.constant 9.99999974E-6 : f32
    %72 = vector.broadcast %cst_43 : f32 to vector<8x1xf32>
    %73 = arith.addf %69, %72 : vector<8x1xf32>
    %74 = math.rsqrt %73 : vector<8x1xf32>
    %75 = vector.broadcast %74 : vector<8x1xf32> to vector<8x32xf32>
    %76 = arith.mulf %71, %75 : vector<8x32xf32>
    %c0_44 = arith.constant 0 : index
    %c0_45 = arith.constant 0 : index
    %77 = vector.load %arg11[%c0_44, %c0_45] : memref<1x32xf32, #tpu.memory_space<vmem>>, vector<1x32xf32>
    %78 = vector.broadcast %77 : vector<1x32xf32> to vector<8x32xf32>
    %79 = arith.mulf %76, %78 : vector<8x32xf32>
    %c0_46 = arith.constant 0 : index
    %c0_47 = arith.constant 0 : index
    %80 = vector.load %arg12[%c0_46, %c0_47] : memref<1x32xf32, #tpu.memory_space<vmem>>, vector<1x32xf32>
    %81 = vector.broadcast %80 : vector<1x32xf32> to vector<8x32xf32>
    %82 = arith.addf %79, %81 : vector<8x32xf32>
    %c0_48 = arith.constant 0 : index
    %c0_49 = arith.constant 0 : index
    %c0_50 = arith.constant 0 : index
    %83 = vector.load %arg13[%c0_48, %c0_49, %c0_50] : memref<1x8x32xf32, #tpu.memory_space<vmem>>, vector<1x8x32xf32>
    %84 = vector.shape_cast %83 : vector<1x8x32xf32> to vector<8x32xf32>
    %85 = vector.shape_cast %82 : vector<8x32xf32> to vector<1x8x32xf32>
    tpu.vector_store %arg13[%c0_48, %c0_49, %c0_50], %85 {strides = array<i32>} : memref<1x8x32xf32, #tpu.memory_space<vmem>>, vector<1x8x32xf32>,
    return
  }
  func.func @transform_0(%arg0: i32, %arg1: i32) -> (i32, i32, i32) {
    %c0_i32 = arith.constant 0 : i32
    %c0_i32_0 = arith.constant 0 : i32
    return %arg0, %arg1, %c0_i32 : i32, i32, i32
  }
  func.func @transform_1(%arg0: i32, %arg1: i32) -> (i32, i32, i32) {
    %c0_i32 = arith.constant 0 : i32
    %c0_i32_0 = arith.constant 0 : i32
    %c0_i32_1 = arith.constant 0 : i32
    return %arg0, %c0_i32, %c0_i32_0 : i32, i32, i32
  }
  func.func @transform_2(%arg0: i32, %arg1: i32) -> (i32, i32, i32) {
    %c0_i32 = arith.constant 0 : i32
    %c0_i32_0 = arith.constant 0 : i32
    %c0_i32_1 = arith.constant 0 : i32
    return %arg0, %c0_i32, %c0_i32_0 : i32, i32, i32
  }
  func.func @transform_3(%arg0: i32, %arg1: i32) -> (i32, i32, i32) {
    %c0_i32 = arith.constant 0 : i32
    %c0_i32_0 = arith.constant 0 : i32
    return %arg0, %arg1, %c0_i32 : i32, i32, i32
  }
  func.func @transform_4(%arg0: i32, %arg1: i32) -> (i32, i32, i32) {
    %c0_i32 = arith.constant 0 : i32
    %c0_i32_0 = arith.constant 0 : i32
    %c0_i32_1 = arith.constant 0 : i32
    %c0_i32_2 = arith.constant 0 : i32
    return %c0_i32, %c0_i32_0, %c0_i32_1 : i32, i32, i32
  }
  func.func @transform_5(%arg0: i32, %arg1: i32) -> (i32, i32, i32) {
    %c0_i32 = arith.constant 0 : i32
    %c0_i32_0 = arith.constant 0 : i32
    %c0_i32_1 = arith.constant 0 : i32
    %c0_i32_2 = arith.constant 0 : i32
    return %c0_i32, %c0_i32_0, %c0_i32_1 : i32, i32, i32
  }
  func.func @transform_6(%arg0: i32, %arg1: i32) -> (i32, i32, i32) {
    %c0_i32 = arith.constant 0 : i32
    %c0_i32_0 = arith.constant 0 : i32
    %c0_i32_1 = arith.constant 0 : i32
    %c0_i32_2 = arith.constant 0 : i32
    return %c0_i32, %c0_i32_0, %c0_i32_1 : i32, i32, i32
  }
  func.func @transform_7(%arg0: i32, %arg1: i32) -> (i32, i32, i32) {
    %c0_i32 = arith.constant 0 : i32
    %c0_i32_0 = arith.constant 0 : i32
    %c0_i32_1 = arith.constant 0 : i32
    %c0_i32_2 = arith.constant 0 : i32
    return %c0_i32, %c0_i32_0, %c0_i32_1 : i32, i32, i32
  }
  func.func @transform_8(%arg0: i32, %arg1: i32) -> (i32, i32) {
    %c0_i32 = arith.constant 0 : i32
    %c0_i32_0 = arith.constant 0 : i32
    %c0_i32_1 = arith.constant 0 : i32
    return %c0_i32, %c0_i32_0 : i32, i32
  }
  func.func @transform_9(%arg0: i32, %arg1: i32) -> (i32, i32) {
    %c0_i32 = arith.constant 0 : i32
    %c0_i32_0 = arith.constant 0 : i32
    %c0_i32_1 = arith.constant 0 : i32
    return %c0_i32, %c0_i32_0 : i32, i32
  }
  func.func @transform_10(%arg0: i32, %arg1: i32) -> (i32, i32) {
    %c0_i32 = arith.constant 0 : i32
    %c0_i32_0 = arith.constant 0 : i32
    %c0_i32_1 = arith.constant 0 : i32
    return %c0_i32, %c0_i32_0 : i32, i32
  }
  func.func @transform_11(%arg0: i32, %arg1: i32) -> (i32, i32, i32) {
    %c0_i32 = arith.constant 0 : i32
    %c0_i32_0 = arith.constant 0 : i32
    return %arg0, %arg1, %c0_i32 : i32, i32, i32
  }
  func.func @transform_12(%arg0: i32, %arg1: i32) -> (i32, i32, i32, i32) {
    %c0_i32 = arith.constant 0 : i32
    %c0_i32_0 = arith.constant 0 : i32
    %c0_i32_1 = arith.constant 0 : i32
    return %arg0, %c0_i32, %arg1, %c0_i32_0 : i32, i32, i32, i32
  }
}

</mosaic_0001>

<bundles_post_ra>
// kernel: tpu_custom_call.1
= control target key start
LH: loop header
LB: loop body
LE: loop exit
PB: predicated region body
PF: predicated region fallthrough
CT: control target
= control target key end

     0   :  { %s2500_s0 = inlined_call_operand.hbm [shape: f32[2,8,32], index: 0, kind: input, shape index: {}]   ;;  %s2501_s1 = inlined_call_operand.hbm [shape: bf16[2,8,32], index: 1, kind: input, shape index: {}]   ;;  %s2502_s2 = inlined_call_operand.hbm [shape: bf16[2,8,32], index: 2, kind: input, shape index: {}]   ;;  %s2503_s3 = inlined_call_operand.hbm [shape: bf16[2,8,8], index: 3, kind: input, shape index: {}]   ;;  %s2504_s4 = inlined_call_operand.hbm [shape: bf16[4,8,32], index: 4, kind: input, shape index: {}]   ;;  %s2505_s5 = inlined_call_operand.hbm [shape: bf16[4,8,32], index: 5, kind: input, shape index: {}]   ;;  %s2506_s6 = inlined_call_operand.hbm [shape: bf16[4,8,32], index: 6, kind: input, shape index: {}]   ;;  %s2507_s7 = inlined_call_operand.hbm [shape: bf16[4,8,32], index: 7, kind: input, shape index: {}]   ;;  %s2508_s8 = inlined_call_operand.vmem [shape: f32[1,32], index: 8, kind: input, shape index: {}]   ;;  %s2509_s9 = inlined_call_operand.vmem [shape: f32[1,32], index: 9, kind: input, shape index: {}]   ;;  %s2510_s10 = inlined_call_operand.vmem [shape: f32[1,32], index: 10, kind: input, shape index: {}]   ;;  %s2511_s11 = inlined_call_operand.hbm [shape: f32[2,8,32], index: 11, kind: output, shape index: {0}]   ;;  %s2512_s12 = inlined_call_operand.hbm [shape: f32[2,4,8,8], index: 12, kind: output, shape index: {1}]  }
   0x1   :  { %2526 = sst [smem:[#allocation33_spill]] %s2501_s1 }
   0x2   :  { %2527 = sst [smem:[#allocation34_spill]] %s2504_s4 }
   0x3   :  { %2528 = sst [smem:[#allocation35_spill]] %s2505_s5 }
   0x4   :  { %2529 = sst [smem:[#allocation36_spill]] %s2506_s6 }
   0x5   :  { %2530 = sst [smem:[#allocation37_spill]] %s2509_s9 }
   0x6   :  { %2531 = sst [smem:[#allocation38_spill]] %s2510_s10 }
   0x7   :  { %2532 = sst [smem:[#allocation39_spill]] %s2511_s11 }
   0x8   :  { %2533 = sst [smem:[#allocation40_spill]] %s2512_s12 }
   0x9   :  { %18 = vsyncpa [#allocation3], 0 }
   0xa   :  { %20 = vsyncpa [#allocation3 + $0x1], 0 }
   0xb   :  { %21 = vsyncpa [#allocation6], 0 }
   0xc   :  { %23 = vsyncpa [#allocation6 + $0x1], 0 }
   0xd   :  { %24 = vsyncpa [#allocation9], 0 }
   0xe   :  { %26 = vsyncpa [#allocation9 + $0x1], 0 }
   0xf   :  { %27 = vsyncpa [#allocation12], 0 }
  0x10   :  { %28 = vsyncpa [#allocation15], 0 }
  0x11   :  { %29 = vsyncpa [#allocation4], 0 }
  0x12   :  { %31 = vsyncpa [#allocation4 + $0x1], 0 }
  0x13   :  { %32 = vsyncpa [#allocation18], 0 }
  0x14   :  { %34 = vsyncpa [#allocation18 + $0x1], 0  ;;  %s2142_s21 = smov 0   ;;  %s2144_s22 = smov 0  }
  0x15   :  { %s2146_s23 = smov 0   ;;  %s2148_s24 = smov 0  }
  0x16   :  { %s2150_s25 = smov 0   ;;  %s2152_s26 = smov 0  }
  0x17 LB: > { %2534 = sst [smem:[#allocation27_spill]] %s2046_s21  ;;  %s2173_s27 = sadd.s32 4294967295, %s2066_s26   ;;  %s2066_s26 = sphi %s2152_s26, %s40_s26   ;;  %s2062_s25 = sphi %s2150_s25, %s2567_s25   ;;  %s2058_s24 = sphi %s2148_s24, %s2566_s24   ;;  %s2054_s23 = sphi %s2146_s23, %s2562_s23   ;;  %s2050_s22 = sphi %s2144_s22, %s2565_s22   ;;  %s2046_s21 = sphi %s2142_s21, %s2564_s21  }
  0x18   : > { %2535 = sst [smem:[#allocation28_spill]] %s2054_s23  ;;  %s1483_s28 = sadd.s32 4294967294, %s2066_s26  }
  0x19   : > { %p74_p0 = scmp.ne.s32.totalorder %s2050_s22, %s2046_s21  ;;  %p75_p1 = scmp.eq.s32.totalorder %s2173_s27, 0 }
  0x1a   : > { %p327_p2 = scmp.eq.s32.totalorder %s2173_s27, 1  ;;  %p333_p3 = scmp.eq.s32.totalorder %s1483_s28, 1 }
  0x1b   : > { %p2182_p4 = por %p75_p1, %p74_p0  ;;  %p1484_p5 = scmp.ge.s32.totalorder %s2066_s26, 1 }
  0x1c   : > { %p2187_p6 = por %p333_p3, %p74_p0  ;;  %p368_p7 = scmp.lt.s32.totalorder %s2066_s26, 3 }
  0x1d   : > { %s2539_s4 = sld [smem:[#allocation34_spill]]  ;;  %s2068_s17 = smov [#allocation10]  }
  0x1e   : > { %s2537_s30 = scalar_select %p2187_p6, 1, 0 }
  0x1f   : > { %p2195_p8 = pnand %p1484_p5, %p368_p7  ;;  %s381_s18 = sshll.u32 %s2068_s17, 4  ;;  %s382_s18 = int_to_ptr.vmem [resolvable:$true] %s381_s18 }
  0x20   : > { %2538 = sst [smem:[#allocation29_spill]] %s2537_s30  ;;  %s2514_s14 = smov 64  }
  0x21   : > { %p1569_p9 = pneg %p2195_p8  ;;  %s2542_s5 = sld [smem:[#allocation35_spill]] }
  0x22   : > { %s2516_s17 = smov 4   ;;  %s52_s20 = sadd.s32 1, %s2062_s25 }
  0x23   : > { %s379_s15 = sshll.u32 %s2539_s4, 4  ;;  %p2203_p10 = pnand %p1569_p9, %p75_p1  ;;  %s380_s15 = int_to_ptr.hbm [resolvable:$true] %s379_s15 }
  0x24   : > { %s2071_s4 = smov [#allocation11]   ;;  %s61_s28 = sadd.s32 1, %s2054_s23 }
  0x25   : > { %1572 = dma.hbm_to_vmem [thread:$0]  (!%p2203_p10), %s380_s15, 256, %s382_s18, [#allocation9], %s2514_s14, %s2514_s14, %s2516_s17  }
  0x26   : > { %s395_s30 = sshll.u32 %s2071_s4, 4  ;;  %p54_p12 = scmp.ge.s32.totalorder %s52_s20, 2  ;;  %s396_s30 = int_to_ptr.vmem [resolvable:$true] %s395_s30 }
  0x27   : > { %s393_s13 = sshll.u32 %s2542_s5, 4  ;;  %p68_p13 = scmp.ne.s32.totalorder %s2054_s23, %s2050_s22  ;;  %s394_s13 = int_to_ptr.hbm [resolvable:$true] %s393_s13 }
  0x28   : > { %1575 = dma.hbm_to_vmem [thread:$0]  (!%p2203_p10), %s394_s13, 256, %s396_s30, [#allocation12], %s2514_s14, %s2514_s14, %s2516_s17  }
  0x29   : > { %p69_p0 = scmp.eq.s32.totalorder %s2066_s26, 0  ;;  %p1606_p3 = scmp.lt.s32.totalorder %s2066_s26, 2 }
  0x2a   : > { %s2569_s20 = smov (%p54_p12, %s52_s20), 0  ;;  %p2231_p7 = por %p327_p2, %p68_p13 }
  0x2b   : > { %2543 = sst [smem:[#allocation30_spill]] %s2569_s20  ;;  %p70_p5 = por %p69_p0, %p68_p13 }
  0x2c   : > { %s2544_s4 = scalar_select %p2231_p7, 1, 0 }
  0x2d   : > { %s56_s15 = ssub.s32 %s2062_s25, %s2569_s20  ;;  %s2238_s30 = sand.u32 1, %s2054_s23  }
  0x2e   : > { %2545 = sst [smem:[#allocation31_spill]] %s2544_s4  ;;  %p59_p9 = scmp.eq.s32.totalorder %s56_s15, 0 }
  0x2f   : > { %p2240_p11 = pnand %p1606_p3, %p70_p5  ;;  %s2525_s13 = sand.u32 1, %s2066_s26  }
  0x30   : > { %s2246_s14 = sshll.u32 %s2238_s30, 2  ;;  %s2252_s5 = sshll.u32 %s2062_s25, 2 }
  0x31   : > { %s2249_s17 = scalar_select %p59_p9, %s2054_s23, %s61_s28  }
  0x32   : > { %s2548_s1 = sld [smem:[#allocation33_spill]]  ;;  %s470_s15 = scalar_lea.vmem [#allocation5], %s2246_s14 }
  0x33   : > { %2547 = sst [smem:[#allocation32_spill]] %s2249_s17  ;;  %s478_s11 = sshll.u32 %s470_s15, 4  ;;  %s479_s11 = int_to_ptr.vmem [resolvable:$true] %s478_s11 }
  0x34   : > { %s2261_s12 = scalar_lea.sflag [#allocation6], %s2525_s13  ;;  %s2549_s6 = sld [smem:[#allocation36_spill]] }
  0x35   : > { %s2072_s21 = smov [#allocation13]   ;;  %s2550_s4 = smov 4  }
  0x36   : > { %s409_s20 = sshll.u32 %s2072_s21, 4  ;;  %s2551_s13 = smov 64   ;;  %s410_s20 = int_to_ptr.vmem [resolvable:$true] %s409_s20 }
  0x37   : > { %s1490_s17 = sshll.u32 %s2238_s30, 3  ;;  %s1491_s28 = sshll.u32 %s2062_s25, 3 }
  0x38   : > { %s474_s10 = scalar_lea.hbm %s2548_s1, %s2252_s5  ;;  %s421_s1 = sshll.u32 %s2507_s7, 4  ;;  %s422_s1 = int_to_ptr.hbm [resolvable:$true] %s421_s1 }
  0x39   : > { %s476_s9 = sshll.u32 %s474_s10, 4  ;;  %s447_s19 = scalar_lea.sflag [#allocation3], %s2238_s30  ;;  %s477_s9 = int_to_ptr.hbm [resolvable:$true] %s476_s9 }
  0x3a   : > { %1588 = dma.hbm_to_vmem [thread:$0]  (!%p2240_p11), %s477_s9, 64, %s479_s11, %s2261_s12  }
  0x3b   : > { %s407_s23 = sshll.u32 %s2549_s6, 4  ;;  %s2073_s9 = smov [#allocation14]   ;;  %s408_s23 = int_to_ptr.hbm [resolvable:$true] %s407_s23 }
  0x3c   : > { %1578 = dma.hbm_to_vmem [thread:$0]  (!%p2203_p10), %s408_s23, 256, %s410_s20, [#allocation12], %s2551_s13, %s2551_s13, %s2550_s4  }
  0x3d   : > { %s423_s11 = sshll.u32 %s2073_s9, 4  ;;  %s455_s23 = scalar_lea.hbm %s2500_s0, %s1491_s28  ;;  %s424_s11 = int_to_ptr.vmem [resolvable:$true] %s423_s11 }
  0x3e   : > { %1581 = dma.hbm_to_vmem [thread:$0]  (!%p2203_p10), %s422_s1, 256, %s424_s11, [#allocation15], %s2551_s13, %s2551_s13, %s2550_s4  }
  0x3f   : > { %s450_s20 = scalar_lea.vmem [#allocation2], %s1490_s17  ;;  %s457_s6 = sshll.u32 %s455_s23, 4  ;;  %s458_s6 = int_to_ptr.hbm [resolvable:$true] %s457_s6 }
  0x40   : > { %s459_s15 = sshll.u32 %s450_s20, 4  ;;  %s493_s13 = scalar_lea.hbm %s2502_s2, %s2252_s5  ;;  %s460_s15 = int_to_ptr.vmem [resolvable:$true] %s459_s15 }
  0x41   : > { %1585 = dma.hbm_to_vmem [thread:$0]  (!%p2240_p11), %s458_s6, 128, %s460_s15, %s447_s19  }
  0x42   : > { %s489_s9 = scalar_lea.vmem [#allocation7], %s2246_s14  ;;  %s495_s21 = sshll.u32 %s493_s13, 4  ;;  %s496_s21 = int_to_ptr.hbm [resolvable:$true] %s495_s21 }
  0x43   : > { %s497_s11 = sshll.u32 %s489_s9, 4  ;;  %s513_s10 = scalar_lea.hbm %s2503_s3, %s2252_s5  ;;  %s498_s11 = int_to_ptr.vmem [resolvable:$true] %s497_s11 }
  0x44   : > { %1591 = dma.hbm_to_vmem [thread:$0]  (!%p2240_p11), %s496_s21, 64, %s498_s11, %s2261_s12  }
  0x45   : > { %s508_s23 = scalar_lea.vmem [#allocation8], %s2246_s14  ;;  %s515_s20 = sshll.u32 %s513_s10, 4  ;;  %s516_s20 = int_to_ptr.hbm [resolvable:$true] %s515_s20 }
  0x46   : > { %s517_s30 = sshll.u32 %s508_s23, 4  ;;  %s2552_s6 = sand.u32 1, %s2066_s26   ;;  %s518_s30 = int_to_ptr.vmem [resolvable:$true] %s517_s30 }
  0x47   : > { %s505_s15 = scalar_lea.sflag [#allocation9], %s2552_s6  ;;  %526 = sbr.rel (%p2195_p8) target bundleno = 1201 (0x4b1), region = 64 }
  0x48   : > { %1594 = dma.hbm_to_vmem [thread:$0]  (!%p2240_p11), %s516_s20, 64, %s518_s30, %s505_s15  }
  0x49   : > { %s2310_s19 = sand.u32 (!%p2195_p8), 1, %s2050_s22  }
  0x4a   : > { %s1499_s5 = sshll.u32 (!%p2195_p8), %s2310_s19, 3  ;;  %s529_s12 = scalar_lea.sflag (!%p2195_p8), [#allocation3], %s2310_s19 }
  0x4b   : > { %s2316_s14 = scalar_lea.vmem (!%p2195_p8), [#allocation2], %s1499_s5 }
  0x4c   : > { %2013 = dma.done.wait (%p2182_p4), %s529_s12, 128  }
  0x4d   : > { %2015 = vsyncadd (%p2182_p4), %s529_s12, 4294967168  ;;  %s538_s16 = sand.u32 1, %s2173_s27   ;;  %s2324_s18 = sshll.u32 %s2310_s19, 2 }
  0x4e   : > { %s539_s1 = scalar_lea.sflag [#allocation6], %s538_s16  ;;  %s542_s4 = scalar_lea.vmem [#allocation5], %s2324_s18 }
  0x4f   : > { %2017 = dma.done.wait (%p2182_p4), %s539_s1, 128  }
  0x50   : > { %2019 = vsyncadd (%p2182_p4), %s539_s1, 4294967168  ;;  %s552_s13 = scalar_lea.vmem [#allocation7], %s2324_s18  ;;  %s559_s9 = scalar_lea.sflag [#allocation9], %s538_s16 }
  0x51   : > { %s562_s11 = scalar_lea.vmem [#allocation8], %s2324_s18 }
  0x52   : > { %2021 = dma.done.wait (%p2182_p4), %s559_s9, 64  }
  0x53   : > { %2023 = vsyncadd (%p2182_p4), %s559_s9, 4294967232 }
  0x54   : > { %2025 = dma.done.wait (%p75_p1), [#allocation9], 256  }
  0x55   : > { %2027 = vsyncadd (%p75_p1), [#allocation9], 4294967040 }
  0x56   : > { %2029 = dma.done.wait (%p75_p1), [#allocation12], 512  }
  0x57   : > { %2031 = vsyncadd (%p75_p1), [#allocation12], 4294966784 }
  0x58   : > { %2033 = dma.done.wait (%p75_p1), [#allocation15], 256  }
  0x59   : > { %2035 = vsyncadd (%p75_p1), [#allocation15], 4294967040  ;;  %vm653_vm0 = vcmask 261120   ;;  %v649_v0 = vld [vmem:[#allocation10] sm:$0xf]  ;;  %vm875_vm1 = vcmask 64512  }
  0x5a   : > { %v650_v1 = vld [vmem:[#allocation10 + $0x4] sm:$0xf]  ;;  %v651_v2 = vld [vmem:[#allocation10 + $0x8] sm:$0xf]  ;;  %v658_v3 = vsel %vm653_vm0, %v649_v0, 0  ;;  %vm1011_vm2 = vcmask 1043456  }
  0x5b   : > { %v674_v4 = vsel %vm653_vm0, %v650_v1, 0  ;;  %v690_v5 = vsel %vm653_vm0, %v651_v2, 0  ;;  %v652_v6 = vld [vmem:[#allocation10 + $0xc] sm:$0xf]  ;;  %667 = vmatpush.bf16.xpose.msra.mxu0 %v658_v3  ;;  %v2354_v8 = vld [vmem:[%s2316_s14] sm:$0xff]  ;;  %s1508_s27 = sshll.u32 %s2310_s19, 5 }
  0x5c   : > { %683 = vmatpush.bf16.xpose.msra.mxu1 %v674_v4  ;;  %v706_v7 = vsel %vm653_vm0, %v652_v6, 0  ;;  %v721_v9 = vld [vmem:[#allocation11] sm:$0xf]  ;;  %v722_v10 = vld [vmem:[#allocation11 + $0x4] sm:$0xf]  ;;  %699 = vmatpush.bf16.xpose.msra.mxu2 %v690_v5  ;;  %v646_v17 = vpack.c.bf16 %v2354_v8, %v2354_v8  ;;  %s2405_s29 = scalar_lea.vmem [#allocation17], %s1508_s27 }
  0x5d   : > { %715 = vmatpush.bf16.xpose.msra.mxu3 %v706_v7  ;;  %v729_v11 = vsel %vm653_vm0, %v721_v9, 0  ;;  %v745_v12 = vsel %vm653_vm0, %v722_v10, 0  ;;  %v723_v13 = vld [vmem:[#allocation11 + $0x8] sm:$0xf]  ;;  %v724_v14 = vld [vmem:[#allocation11 + $0xc] sm:$0xf] }
  0x5e   : > { %v761_v15 = vsel %vm653_vm0, %v723_v13, 0  ;;  %v777_v16 = vsel %vm653_vm0, %v724_v14, 0  ;;  %v647_v18 = vld [vmem:[%s542_s4] sm:$0xf]  ;;  %v792_v19 = vld [vmem:[#allocation13] sm:$0xf] }
  0x5f   : > { %v793_v20 = vld [vmem:[#allocation13 + $0x4] sm:$0xf]  ;;  %v794_v21 = vld [vmem:[#allocation13 + $0x8] sm:$0xf]  ;;  %v800_v22 = vsel %vm653_vm0, %v792_v19, 0  ;;  %s1540_s10 = sshll.u32 %s2058_s24, 5 }
  0x60   : > { %v816_v23 = vsel %vm653_vm0, %v793_v20, 0  ;;  %v832_v24 = vsel %vm653_vm0, %v794_v21, 0  ;;  %v795_v25 = vld [vmem:[#allocation13 + $0xc] sm:$0xf]  ;;  %v648_v26 = vld [vmem:[%s552_s13] sm:$0xf] }
  0x61   : > { %v848_v27 = vsel %vm653_vm0, %v795_v25, 0  ;;  %v871_v9 = vld [vmem:[%s562_s11] sm:$0xf]  ;;  %s2554_s20 = sld [smem:[#allocation40_spill]]  ;;  %s1256_s15 = sshll.u32 %s2405_s29, 4  ;;  %s1257_s15 = int_to_ptr.vmem [resolvable:$true] %s1256_s15 }
  0x62   : > { %1509 = vmatmul.msk.bf16.vlgmr.msra.gmra.mxu0 %vm653_vm0, %v646_v17  ;;  %v872_v10 = vunpack.c.l.bf16 %v871_v9  ;;  %s1228_s14 = scalar_lea.sflag [#allocation18], %s2310_s19 }
  0x63   : > { %738 = vmatpush.bf16.xpose.msrb.mxu0 %v729_v11  ;;  %1510 = vmatmul.msk.bf16.vlgmr.msra.gmra.mxu1 %vm653_vm0, %v646_v17 }
  0x64   : > { %754 = vmatpush.bf16.xpose.msrb.mxu1 %v745_v12  ;;  %770 = vmatpush.bf16.xpose.msrb.mxu2 %v761_v15  ;;  %v873_v11 = vsub.f32 1.0, %v872_v10 }
  0x65   : > { %786 = vmatpush.bf16.xpose.msrb.mxu3 %v777_v16  ;;  %1511 = vmatmul.msk.bf16.vlgmr.msra.gmra.mxu2 %vm653_vm0, %v646_v17 }
  0x66   : > { %1512 = vmatmul.msk.bf16.vlgmr.msra.gmra.mxu3 %vm653_vm0, %v646_v17  ;;  %v874_v12 = vmul.f32 -1e+09, %v873_v11 }
  0x67   : > { %s1255_s6 = scalar_lea.hbm %s2554_s20, %s1540_s10  ;;  %s1952_s13 = scalar_lea.hbm %s2554_s20, 64 }
  0x68   : > { %s1258_s12 = sshll.u32 %s1255_s6, 4  ;;  %s1259_s12 = int_to_ptr.hbm [resolvable:$true] %s1258_s12 }
  0x69   : > { %s1946_s16 = sshra.s32 %s1259_s12, 4  ;;  %s1947_s16 = int_to_ptr.hbm [resolvable:$true] %s1946_s16 }
  0x6a   : > { %s1948_s18 = scalar_lea.hbm %s1947_s16, 32  ;;  %p1953_p8 = scmp.lt.s32.totalorder %s1947_s16, %s2554_s20 }
  0x6b   : > { %809 = vmatpush.bf16.xpose.msra.mxu0 %v800_v22  ;;  %p1949_p1 = scmp.ne.s32.totalorder %s1947_s16, %s1948_s18  ;;  %p1954_p10 = scmp.lt.s32.totalorder %s1952_s13, %s1948_s18 }
  0x6c   : > { %825 = vmatpush.bf16.xpose.msra.mxu1 %v816_v23  ;;  %841 = vmatpush.bf16.xpose.msra.mxu2 %v832_v24 }
  0x6d   : > { %857 = vmatpush.bf16.xpose.msra.mxu3 %v848_v27  ;;  %p1950_p2 = pnand %p1949_p1, %p2231_p7  ;;  %p1955_p11 = por %p1954_p10, %p1953_p8 }
  0x6f   : > { %p1951_p4 = pneg %p1950_p2 }
  0x71   : > { %p1956_p12 = pnand %p1955_p11, %p1951_p4 }
  0x72   : > { %1513 = vmatmul.msk.bf16.vlgmr.msrb.gmra.mxu0 %vm653_vm0, %v647_v18 }
  0x73   : > { %1514 = vmatmul.msk.bf16.vlgmr.msrb.gmra.mxu1 %vm653_vm0, %v647_v18 }
  0x75   : > { %1515 = vmatmul.msk.bf16.vlgmr.msrb.gmra.mxu2 %vm653_vm0, %v647_v18 }
  0x76   : > { %1516 = vmatmul.msk.bf16.vlgmr.msrb.gmra.mxu3 %vm653_vm0, %v647_v18 }
  0x82   : > { %1517 = vmatmul.msk.bf16.vlgmr.msra.gmra.mxu0 %vm653_vm0, %v648_v26 }
  0x83   : > { %1518 = vmatmul.msk.bf16.vlgmr.msra.gmra.mxu1 %vm653_vm0, %v648_v26 }
  0x85   : > { %1519 = vmatmul.msk.bf16.vlgmr.msra.gmra.mxu2 %vm653_vm0, %v648_v26 }
  0x86   : > { %1520 = vmatmul.msk.bf16.vlgmr.msra.gmra.mxu3 %vm653_vm0, %v648_v26 }
  0xdf   : > { %v669_v28 = vpop.f32.mrf.mxu0 }
  0xe0   : > { %v685_v29 = vpop.f32.mrf.mxu1  ;;  %v863_v49 = vpack.c.bf16 %v669_v28, %v669_v28 }
  0xe1   : > { %v864_v44 = vpack.c.bf16 %v685_v29, %v685_v29 }
  0xe7   : > { %v671_v32 = vpop.f32.mrf.mxu0 }
  0xe8   : > { %v701_v30 = vpop.f32.mrf.mxu2  ;;  %v687_v33 = vpop.f32.mrf.mxu1 }
  0xe9   : > { %v717_v31 = vpop.f32.mrf.mxu3  ;;  %v865_v54 = vpack.c.bf16 %v701_v30, %v701_v30 }
  0xea   : > { %v866_v55 = vpack.c.bf16 %v717_v31, %v717_v31 }
  0xef   : > { %v740_v36 = vpop.f32.mrf.mxu0 }
  0xf0   : > { %v703_v34 = vpop.f32.mrf.mxu2  ;;  %v756_v37 = vpop.f32.mrf.mxu1  ;;  %v867_v38 = vpack.c.bf16 %v740_v36, %v740_v36 }
  0xf1   : > { %v719_v35 = vpop.f32.mrf.mxu3  ;;  %v868_v39 = vpack.c.bf16 %v756_v37, %v756_v37 }
  0xf2   : > { %v880_v40 = vsel %vm875_vm1, %v867_v38, 0 }
  0xf3   : > { %v899_v41 = vsel %vm875_vm1, %v868_v39, 0  ;;  %889 = vmatpush.bf16.xpose.msrb.mxu0 %v880_v40 }
  0xf4   : > { %908 = vmatpush.bf16.xpose.msrb.mxu1 %v899_v41 }
  0xf7   : > { %v742_v47 = vpop.f32.mrf.mxu0 }
  0xf8   : > { %v772_v42 = vpop.f32.mrf.mxu2  ;;  %v758_v48 = vpop.f32.mrf.mxu1 }
  0xf9   : > { %v788_v43 = vpop.f32.mrf.mxu3  ;;  %v869_v45 = vpack.c.bf16 %v772_v42, %v772_v42 }
  0xfa   : > { %v870_v46 = vpack.c.bf16 %v788_v43, %v788_v43  ;;  %1521 = vmatmul.msk.bf16.vlgmr.msrb.gmra.mxu0 %vm875_vm1, %v863_v49 }
  0xfb   : > { %v918_v50 = vsel %vm875_vm1, %v869_v45, 0  ;;  %1522 = vmatmul.msk.bf16.vlgmr.msrb.gmra.mxu1 %vm875_vm1, %v864_v44 }
  0xfc   : > { %v937_v51 = vsel %vm875_vm1, %v870_v46, 0  ;;  %927 = vmatpush.bf16.xpose.msrb.mxu2 %v918_v50 }
  0xfd   : > { %946 = vmatpush.bf16.xpose.msrb.mxu3 %v937_v51 }
  0xff   : > { %v811_v56 = vpop.f32.mrf.mxu0 }
 0x100   : > { %v774_v52 = vpop.f32.mrf.mxu2  ;;  %v992_v57 = vpack.c.bf16 %v811_v56, %v811_v56  ;;  %v827_v58 = vpop.f32.mrf.mxu1 }
 0x101   : > { %v790_v53 = vpop.f32.mrf.mxu3  ;;  %v993_v59 = vpack.c.bf16 %v827_v58, %v827_v58 }
 0x102   : > { %v1013_v60 = vsel %vm1011_vm2, %v992_v57, 0 }
 0x103   : > { %1523 = vmatmul.msk.bf16.vlgmr.msrb.gmra.mxu2 %vm875_vm1, %v865_v54  ;;  %v1032_v61 = vsel %vm1011_vm2, %v993_v59, 0  ;;  %1022 = vmatpush.bf16.msra.mxu0 %v1013_v60 }
 0x104   : > { %1524 = vmatmul.msk.bf16.vlgmr.msrb.gmra.mxu3 %vm875_vm1, %v866_v55  ;;  %1041 = vmatpush.bf16.msra.mxu1 %v1032_v61 }
 0x107   : > { %v813_v63 = vpop.f32.mrf.mxu0 }
 0x108   : > { %v843_v62 = vpop.f32.mrf.mxu2  ;;  %v829_v1 = vpop.f32.mrf.mxu1 }
 0x109   : > { %v994_v0 = vpack.c.bf16 %v843_v62, %v843_v62  ;;  %v859_v3 = vpop.f32.mrf.mxu3  ;;  %v1089_v1 = vld [vmem:[#allocation14] sm:$0xf] }
 0x10a   : > { %v995_v4 = vpack.c.bf16 %v859_v3, %v859_v3  ;;  %v1090_v3 = vld [vmem:[#allocation14 + $0x4] sm:$0xf] }
 0x10b   : > { %v1051_v2 = vsel %vm1011_vm2, %v994_v0, 0 }
 0x10c   : > { %1060 = vmatpush.bf16.msra.mxu2 %v1051_v2  ;;  %v1070_v6 = vsel %vm1011_vm2, %v995_v4, 0  ;;  %v1097_v2 = vsel %vm1011_vm2, %v1089_v1, 0  ;;  %v1116_v4 = vsel %vm1011_vm2, %v1090_v3, 0 }
 0x10d   : > { %1079 = vmatpush.bf16.msra.mxu3 %v1070_v6  ;;  %1106 = vmatpush.bf16.msrb.mxu0 %v1097_v2 }
 0x10e   : > { %1125 = vmatpush.bf16.msrb.mxu1 %v1116_v4 }
 0x110   : > { %v845_v5 = vpop.f32.mrf.mxu2 }
 0x111   : > { %v861_v7 = vpop.f32.mrf.mxu3  ;;  %v1091_v5 = vld [vmem:[#allocation14 + $0x8] sm:$0xf] }
 0x112   : > { %v1135_v6 = vsel %vm1011_vm2, %v1091_v5, 0  ;;  %v1092_v7 = vld [vmem:[#allocation14 + $0xc] sm:$0xf] }
 0x113   : > { %1144 = vmatpush.bf16.msrb.mxu2 %v1135_v6  ;;  %v1154_v9 = vsel %vm1011_vm2, %v1092_v7, 0 }
 0x114   : > { %1163 = vmatpush.bf16.msrb.mxu3 %v1154_v9 }
 0x177   : > { %v891_v13 = vpop.f32.mrf.mxu0 }
 0x178   : > { %v910_v14 = vpop.f32.mrf.mxu1  ;;  %v892_v15 = vadd.f32 %v891_v13, %v874_v12 }
 0x179   : > { %v911_v17 = vadd.f32 %v910_v14, %v874_v12 }
 0x17a   : > { %v952_v16 = vsel %vm875_vm1, %v892_v15, -inf }
 0x17b   : > { %953 = vmax.xlane.f32.xlu1 %v952_v16  ;;  %v955_v20 = vsel %vm875_vm1, %v911_v17, -inf }
 0x17f   : > { %v893_v18 = vpop.f32.mrf.mxu0 }
 0x180   : > { %v912_v19 = vpop.f32.mrf.mxu1 }
 0x183   : > { %956 = vmax.xlane.f32.xlu1 %v955_v20 }
 0x186   : > { %v929_v21 = vpop.f32.mrf.mxu2 }
 0x187   : > { %v948_v22 = vpop.f32.mrf.mxu3  ;;  %v930_v23 = vadd.f32 %v929_v21, %v874_v12 }
 0x188   : > { %v949_v25 = vadd.f32 %v948_v22, %v874_v12 }
 0x189   : > { %v958_v24 = vsel %vm875_vm1, %v930_v23, -inf }
 0x18a   : > { %959 = vmax.xlane.f32.xlu0 %v958_v24  ;;  %v961_v28 = vsel %vm875_vm1, %v949_v25, -inf }
 0x18e   : > { %v931_v26 = vpop.f32.mrf.mxu2 }
 0x18f   : > { %v950_v27 = vpop.f32.mrf.mxu3 }
 0x192   : > { %962 = vmax.xlane.f32.xlu0 %v961_v28 }
 0x1ee   : > { %v954_v29 = vpop.xlane.xlu1 %953 }
 0x1ef   : > { %v964_v30 = vsub.f32 %v892_v15, %v954_v29 }
 0x1f1   : > { %v968_v31 = vmul.f32 1.442695, %v964_v30 }
 0x1f3   : > { %1672 = vpow2.f32 %v968_v31 }
 0x1f6   : > { %v957_v32 = vpop.xlane.xlu1 %956 }
 0x1f7   : > { %v965_v33 = vsub.f32 %v911_v17, %v957_v32 }
 0x1f9   : > { %v1673_v34 = vpop.eup %1672  ;;  %v970_v35 = vmul.f32 1.442695, %v965_v33 }
 0x1fa   : > { %v976_v37 = vsel %vm875_vm1, %v1673_v34, 0.0 }
 0x1fb   : > { %1674 = vpow2.f32 %v970_v35  ;;  %977 = vadd.xlane.f32.xlu0 %v976_v37 }
 0x1fd   : > { %v960_v36 = vpop.xlane.xlu0 %959 }
 0x1fe   : > { %v966_v38 = vsub.f32 %v930_v23, %v960_v36 }
 0x200   : > { %v972_v39 = vmul.f32 1.442695, %v966_v38 }
 0x201   : > { %v1675_v40 = vpop.eup %1674 }
 0x202   : > { %1676 = vpow2.f32 %v972_v39  ;;  %v979_v42 = vsel %vm875_vm1, %v1675_v40, 0.0 }
 0x203   : > { %980 = vadd.xlane.f32.xlu1 %v979_v42 }
 0x205   : > { %v963_v41 = vpop.xlane.xlu0 %962 }
 0x206   : > { %v967_v43 = vsub.f32 %v949_v25, %v963_v41  ;;  %v2074_v41 = vmov 32.0  }
 0x208   : > { %v1677_v44 = vpop.eup %1676  ;;  %v974_v45 = vmul.f32 1.442695, %v967_v43 }
 0x209   : > { %v982_v46 = vsel %vm875_vm1, %v1677_v44, 0.0 }
 0x20a   : > { %1678 = vpow2.f32 %v974_v45  ;;  %983 = vadd.xlane.f32.xlu2 %v982_v46 }
 0x210   : > { %v1679_v47 = vpop.eup %1678 }
 0x211   : > { %v985_v48 = vsel %vm875_vm1, %v1679_v47, 0.0 }
 0x212   : > { %986 = vadd.xlane.f32.xlu2 %v985_v48 }
 0x26e   : > { %v978_v49 = vpop.xlane.xlu0 %977 }
 0x26f   : > { %1680 = vrcp.f32 %v978_v49 }
 0x275   : > { %v1681_v50 = vpop.eup %1680 }
 0x276   : > { %v996_v51 = vmul.f32 %v1681_v50, %v1673_v34  ;;  %v981_v52 = vpop.xlane.xlu1 %980  ;;  %v1669_v34 = vld [vmem:[%s2508_s8] ss:$0 sm:$0xff] }
 0x277   : > { %1682 = vrcp.f32 %v981_v52 }
 0x278   : > { %1000 = vst.msk [vmem:[%s2405_s29] sm:$0xff] %vm875_vm1, %v996_v51  ;;  %v1004_v53 = vpack.c.bf16 %v996_v51, %v996_v51 }
 0x27a   : > { %1525 = vmatmul.msk.bf16.vlgmr.msra.gmra.mxu0 %vm875_vm1, %v1004_v53 }
 0x27d   : > { %v984_v54 = vpop.xlane.xlu2 %983  ;;  %v1683_v55 = vpop.eup %1682 }
 0x27e   : > { %1684 = vrcp.f32 %v984_v54  ;;  %v997_v56 = vmul.f32 %v1683_v55, %v1675_v40 }
 0x280   : > { %1001 = vst.msk [vmem:[%s2405_s29 + $0x8] sm:$0xff] %vm875_vm1, %v997_v56  ;;  %v1005_v57 = vpack.c.bf16 %v997_v56, %v997_v56 }
 0x282   : > { %1526 = vmatmul.msk.bf16.vlgmr.msra.gmra.mxu1 %vm875_vm1, %v1005_v57 }
 0x284   : > { %v1685_v58 = vpop.eup %1684 }
 0x285   : > { %v998_v59 = vmul.f32 %v1685_v58, %v1677_v44  ;;  %v987_v60 = vpop.xlane.xlu2 %986 }
 0x286   : > { %1686 = vrcp.f32 %v987_v60 }
 0x287   : > { %1002 = vst.msk [vmem:[%s2405_s29 + $0x10] sm:$0xff] %vm875_vm1, %v998_v59  ;;  %v1006_v61 = vpack.c.bf16 %v998_v59, %v998_v59  ;;  %1688 = vrcp.f32 %v2074_v41 }
 0x289   : > { %1527 = vmatmul.msk.bf16.vlgmr.msra.gmra.mxu2 %vm875_vm1, %v1006_v61 }
 0x28c   : > { %v1687_v62 = vpop.eup %1686 }
 0x28d   : > { %v999_v63 = vmul.f32 %v1687_v62, %v1679_v47  ;;  %v1689_v42 = vpop.eup %1688 }
 0x28e   : > { %v1186_v43 = vmul.f32 32.0, %v1689_v42  ;;  %vm1190_vm3 = vweird.f32 %v1689_v42 }
 0x28f   : > { %1003 = vst.msk [vmem:[%s2405_s29 + $0x18] sm:$0xff] %vm875_vm1, %v999_v63  ;;  %v1007_v0 = vpack.c.bf16 %v999_v63, %v999_v63 }
 0x290   : > { %v1187_v44 = vsub.f32 1.0, %v1186_v43 }
 0x291   : > { %1528 = vmatmul.msk.bf16.vlgmr.msra.gmra.mxu3 %vm875_vm1, %v1007_v0 }
 0x292   : > { %v1188_v45 = vmul.f32 %v1689_v42, %v1187_v44 }
 0x294   : > { %v1189_v46 = vadd.f32 %v1689_v42, %v1188_v45 }
 0x296   : > { %v1191_v47 = vsel %vm1190_vm3, %v1689_v42, %v1189_v46 }
 0x2f7   : > { %v1024_v10 = vpop.f32.mrf.mxu0 }
 0x2f8   : > { %v1085_v11 = vpack.c.bf16 %v1024_v10, %v1024_v10 }
 0x2fa   : > { %1529 = vmatmul.msk.bf16.vlgmr.msrb.gmra.mxu0 %vm875_vm1, %v1085_v11 }
 0x2ff   : > { %v1026_v12 = vpop.f32.mrf.mxu0  ;;  %v1043_v13 = vpop.f32.mrf.mxu1 }
 0x300   : > { %v1086_v14 = vpack.c.bf16 %v1043_v13, %v1043_v13 }
 0x302   : > { %1530 = vmatmul.msk.bf16.vlgmr.msrb.gmra.mxu1 %vm875_vm1, %v1086_v14 }
 0x307   : > { %v1045_v15 = vpop.f32.mrf.mxu1 }
 0x30c   : > { %v1062_v16 = vpop.f32.mrf.mxu2 }
 0x30d   : > { %v1087_v17 = vpack.c.bf16 %v1062_v16, %v1062_v16 }
 0x30f   : > { %1531 = vmatmul.msk.bf16.vlgmr.msrb.gmra.mxu2 %vm875_vm1, %v1087_v17 }
 0x314   : > { %v1064_v18 = vpop.f32.mrf.mxu2  ;;  %v1081_v19 = vpop.f32.mrf.mxu3 }
 0x315   : > { %v1088_v20 = vpack.c.bf16 %v1081_v19, %v1081_v19 }
 0x317   : > { %1532 = vmatmul.msk.bf16.vlgmr.msrb.gmra.mxu3 %vm875_vm1, %v1088_v20 }
 0x31c   : > { %v1083_v21 = vpop.f32.mrf.mxu3 }
 0x377   : > { %v1108_v22 = vpop.f32.mrf.mxu0 }
 0x378   : > { %v1169_v28 = vsel %vm653_vm0, %v1108_v22, 0.0 }
 0x37f   : > { %v1110_v23 = vpop.f32.mrf.mxu0  ;;  %v1127_v24 = vpop.f32.mrf.mxu1 }
 0x380   : > { %v1170_v27 = vsel %vm653_vm0, %v1127_v24, 0.0 }
 0x381   : > { %v1171_v30 = vadd.f32 %v1170_v27, %v1169_v28 }
 0x387   : > { %v1129_v25 = vpop.f32.mrf.mxu1 }
 0x392   : > { %v1146_v26 = vpop.f32.mrf.mxu2 }
 0x393   : > { %v1172_v29 = vsel %vm653_vm0, %v1146_v26, 0.0 }
 0x394   : > { %v1173_v31 = vadd.f32 %v1172_v29, %v1171_v30 }
 0x39a   : > { %v1148_v32 = vpop.f32.mrf.mxu2  ;;  %v1165_v33 = vpop.f32.mrf.mxu3 }
 0x39b   : > { %v1174_v35 = vsel %vm653_vm0, %v1165_v33, 0.0 }
 0x39c   : > { %v1175_v36 = vadd.f32 %v1174_v35, %v1173_v31 }
 0x39e   : > { %v1180_v37 = vadd.f32 %v1669_v34, %v1175_v36 }
 0x3a0   : > { %v1181_v38 = vadd.f32 %v1180_v37, %v2354_v8 }
 0x3a2   : > { %v1167_v39 = vpop.f32.mrf.mxu3  ;;  %v1182_v40 = vsel %vm653_vm0, %v1181_v38, 0.0 }
 0x3a3   : > { %1183 = vadd.xlane.f32.xlu2 %v1182_v40 }
 0x416   : > { %v1184_v48 = vpop.xlane.xlu2 %1183 }
 0x417   : > { %v1192_v49 = vmul.f32 %v1191_v47, %v1184_v48 }
 0x419   : > { %v1193_v8 = vsub.f32 %v1181_v38, %v1192_v49 }
 0x41b   : > { %v1194_v50 = vmul.f32 %v1193_v8, %v1193_v8 }
 0x41d   : > { %v1195_v51 = vsel %vm653_vm0, %v1194_v50, 0.0 }
 0x41e   : > { %1196 = vadd.xlane.f32.xlu0 %v1195_v51 }
 0x41f   : > { %1959 = shalt.err (!%p1956_p12)
}
 0x420   : > { %s2075_s27 = smov 128   ;;  %s2076_s29 = smov 8  }
 0x421   : > { %1566 = dma.vmem_to_hbm [thread:$0]  (%p2231_p7), %s1257_s15, 512, %s1259_s12, %s1228_s14, %s2075_s27, %s2075_s27, %s2076_s29  }
 0x422   : > { %s1535_s21 = sshll.u32 %s2058_s24, 3  ;;  %s2555_s23 = sld [smem:[#allocation37_spill]] }
 0x423   : > { %s2556_s15 = sld [smem:[#allocation39_spill]]  ;;  %s636_s24 = scalar_lea.vmem [#allocation16], %s1499_s5 }
 0x424   : > { %s2557_s18 = sld [smem:[#allocation38_spill]]  ;;  %s1241_s1 = sshll.u32 %s636_s24, 4  ;;  %s1242_s1 = int_to_ptr.vmem [resolvable:$true] %s1241_s1 }
 0x425   : > { %s1223_s13 = scalar_lea.sflag [#allocation4], %s2310_s19 }
 0x428   : > { %v1670_v61 = vld [vmem:[%s2555_s23] ss:$0 sm:$0xff] }
 0x429   : > { %s1239_s12 = scalar_lea.hbm %s2556_s15, %s1535_s21  ;;  %s1980_s5 = scalar_lea.hbm %s2556_s15, 16 }
 0x42a   : > { %v1671_v0 = vld [vmem:[%s2557_s18] ss:$0 sm:$0xff]  ;;  %s1243_s4 = sshll.u32 %s1239_s12, 4  ;;  %s1244_s4 = int_to_ptr.hbm [resolvable:$true] %s1243_s4 }
 0x42b   : > { %s1974_s9 = sshra.s32 %s1244_s4, 4  ;;  %s1975_s9 = int_to_ptr.hbm [resolvable:$true] %s1974_s9 }
 0x42c   : > { %s1976_s11 = scalar_lea.hbm %s1975_s9, 8  ;;  %p1981_p5 = scmp.lt.s32.totalorder %s1975_s9, %s2556_s15 }
 0x42d   : > { %p1977_p13 = scmp.ne.s32.totalorder %s1975_s9, %s1976_s11  ;;  %p1982_p9 = scmp.lt.s32.totalorder %s1980_s5, %s1976_s11 }
 0x42f   : > { %p1978_p0 = pnand %p1977_p13, %p2231_p7  ;;  %p1983_p1 = por %p1982_p9, %p1981_p5 }
 0x431   : > { %p1979_p3 = pneg %p1978_p0 }
 0x433   : > { %p1984_p2 = pnand %p1983_p1, %p1979_p3 }
 0x491   : > { %v1197_v52 = vpop.xlane.xlu0 %1196 }
 0x492   : > { %v1198_v53 = vmul.f32 %v1197_v52, %v1191_v47 }
 0x494   : > { %v1199_v54 = vadd.f32 1e-05, %v1198_v53 }
 0x496   : > { %1690 = vrsqrt.f32 %v1199_v54  ;;  %vm1206_vm5 = vweird.f32 %v1199_v54 }
 0x49c   : > { %v1691_v55 = vpop.eup %1690 }
 0x49d   : > { %v1201_v56 = vmul.f32 %v1691_v55, %v1199_v54  ;;  %vm1207_vm4 = vweird.f32 %v1691_v55 }
 0x49e   : > { %vm1208_vm6 = vmor %vm1206_vm5, %vm1207_vm4 }
 0x49f   : > { %v1202_v57 = vmul.f32 %v1691_v55, %v1201_v56 }
 0x4a1   : > { %v1203_v58 = vmul.f32 0.5, %v1202_v57 }
 0x4a3   : > { %v1204_v59 = vsub.f32 1.5, %v1203_v58 }
 0x4a5   : > { %v1205_v60 = vmul.f32 %v1691_v55, %v1204_v59 }
 0x4a7   : > { %v1209_v62 = vsel %vm1208_vm6, %v1691_v55, %v1205_v60 }
 0x4a8   : > { %v1210_v63 = vmul.f32 %v1209_v62, %v1193_v8 }
 0x4aa   : > { %v1215_v1 = vmul.f32 %v1670_v61, %v1210_v63 }
 0x4ac   : > { %v1220_v2 = vadd.f32 %v1671_v0, %v1215_v1 }
 0x4ae   : > { %1221 = vst.msk [vmem:[%s636_s24] sm:$0xff] %vm653_vm0, %v1220_v2 }
 0x4af   : > { %1987 = shalt.err (!%p1984_p2)
}
 0x4b0   : > { %1565 = dma.vmem_to_hbm [thread:$0]  (%p2231_p7), %s1242_s1, 128, %s1244_s4, %s1223_s13  }
 0x4b1 PF: > { %s2558_s19 = sld [smem:[#allocation27_spill]]  ;;  %p2560_p4 = scmp.ge.s32.totalorder %s2066_s26, 2 }
 0x4b3   : > { %p1596_p8 = pnand %p2560_p4, %p2187_p6 }
 0x4b5   : > { %p1597_p10 = pneg %p1596_p8 }
 0x4b7   : > { %s1273_s23 = sand.u32 1, %s2558_s19  }
 0x4b8   : > { %s1274_s30 = scalar_lea.sflag [#allocation4], %s1273_s23 }
 0x4b9   : > { %2037 = dma.done.wait (%p1597_p10), %s1274_s30, 128  }
 0x4ba   : > { %2039 = vsyncadd (%p1597_p10), %s1274_s30, 4294967168  ;;  %s1284_s6 = scalar_lea.sflag [#allocation18], %s1273_s23 }
 0x4bb   : > { %2041 = dma.done.wait (%p1597_p10), %s1284_s6, 512  }
 0x4bc   : > { %2043 = vsyncadd (%p1597_p10), %s1284_s6, 4294966784  ;;  %s40_s26 = sadd.s32 1, %s2066_s26   ;;  %s2561_s28 = sld [smem:[#allocation28_spill]] }
 0x4bd   : > { %p37_p11 = scmp.ge.s32.totalorder %s40_s26, 4   ;;  %s2562_s23 = sld [smem:[#allocation32_spill]] }
 0x4be   : > { %s2563_s12 = sld [smem:[#allocation30_spill]]  ;;  %s2564_s21 = smov %s2050_s22 }
 0x4bf   : > { %s2566_s24 = smov %s2062_s25 }
 0x4c0   :  { %39 = sbr.rel (!%p37_p11) target bundleno = 23 (0x17), region = 179 }
 0x4c2   : > { %s2565_s22 = smov %s2561_s28 }
 0x4c4   : > { %s2567_s25 = smov %s2563_s12 }
 0x4c5   :  { %1290 = vsyncpa [#allocation3], 1 }
 0x4c6   :  { %1292 = vsyncpa [#allocation3 + $0x1], 1 }
 0x4c7   :  { %1293 = vsyncpa [#allocation6], 1 }
 0x4c8   :  { %1295 = vsyncpa [#allocation6 + $0x1], 1 }
 0x4c9   :  { %1296 = vsyncpa [#allocation9], 1 }
 0x4ca   :  { %1298 = vsyncpa [#allocation9 + $0x1], 1 }
 0x4cb   :  { %1299 = vsyncpa [#allocation12], 1 }
 0x4cc   :  { %1300 = vsyncpa [#allocation15], 1 }
 0x4cd   :  { %1301 = vsyncpa [#allocation4], 1 }
 0x4ce   :  { %1303 = vsyncpa [#allocation4 + $0x1], 1 }
 0x4cf   :  { %1304 = vsyncpa [#allocation18], 1 }
 0x4d0   :  { %1306 = vsyncpa [#allocation18 + $0x1], 1 }

</bundles_post_ra>
